<compile_context>
chip_gen: v7x
topology: tpu7x:2x2x1
jax: 0.10.0
libtpu: 0.0.40
codegen_flags: <defaults>
</compile_context>

<pallas_src>
import functools

import jax
import jax.numpy as jnp
from jax.experimental import pallas as pl
from jax.experimental.pallas import tpu as pltpu


def _round_up(x, m):
    return (x + m - 1) // m * m


def _vmem_capacity_bytes():
    try:
        return int(pltpu.get_tpu_info().vmem_capacity_bytes)
    except Exception:
        return 64 << 20          # conservative: v7x has the smallest VMEM


def _default_act_dtype():
    # bf16 VPU/EUP exists on v6e / v7x only; keep f32 elsewhere (v5e & older).
    try:
        kind = jax.devices()[0].device_kind.lower()
    except Exception:
        kind = ""
    if "v6" in kind or "v7" in kind:
        return jnp.bfloat16
    return jnp.float32


def _affine_reduce_step(x_ref, wt_ref, b_ref, o_ref, acc_ref, *, m, mm_dtype,
                        act_dtype):
    """Project + tanh one (TB, TS, D) tile, accumulate the (pre-normalized)
    mask-weighted sum over the sequence tile into acc_ref; cast-store last."""
    s = pl.program_id(1)

    @pl.when(s == 0)
    def _():
        acc_ref[...] = jnp.zeros_like(acc_ref)

    tb, ts, dp = x_ref.shape
    # One big (TB*TS, D) x (D, D) MXU matmul per step; the cast to the matmul
    # dtype happens in-kernel (hidden under the MXU) so the unpadded f32 path
    # never pays an extra host-side HBM pad/cast pass.
    x2 = x_ref[...].reshape(tb * ts, dp).astype(mm_dtype)
    y = jnp.dot(x2, wt_ref[...], preferred_element_type=jnp.float32)   # MXU
    y = y + b_ref[...]                       # f32 bias add (VPU)
    y = jnp.tanh(y.astype(act_dtype))        # EUP; bf16 on v6e/v7x, f32 on v5e
    y = y.reshape(tb, ts, dp)

    # Masked, pre-normalized sequence reduction on the VPU/XLU (overlaps with
    # the MXU).  `m` already carries 1/count, so the finalize is just a cast.
    acc_ref[...] += jnp.sum(y.astype(jnp.float32) * m[:, :, None], axis=1)

    @pl.when(s == pl.num_programs(1) - 1)
    def _():
        o_ref[...] = acc_ref[...].astype(o_ref.dtype)


def _masked_kernel(x_ref, wt_ref, b_ref, m_ref, o_ref, acc_ref, *, mm_dtype,
                   act_dtype):
    _affine_reduce_step(x_ref, wt_ref, b_ref, o_ref, acc_ref,
                        m=m_ref[...], mm_dtype=mm_dtype, act_dtype=act_dtype)


def _mean_kernel(x_ref, wt_ref, b_ref, o_ref, acc_ref, *, seq_len, mm_dtype,
                 act_dtype):
    # mask=None path: no ones-mask DMA; validity for padded S rows comes from
    # an in-kernel iota, divisor is the compile-time constant 1/seq_len.
    s = pl.program_id(1)
    tb, ts, _ = x_ref.shape
    row = jax.lax.broadcasted_iota(jnp.int32, (tb, ts), 1) + s * ts
    m = jnp.where(row < seq_len, jnp.float32(1.0 / seq_len), jnp.float32(0.0))
    _affine_reduce_step(x_ref, wt_ref, b_ref, o_ref, acc_ref,
                        m=m, mm_dtype=mm_dtype, act_dtype=act_dtype)


def affine_transformation_layer(x, weight, bias, mask=None, *,
                                matmul_dtype=jnp.bfloat16, act_dtype=None):
    """Forward pass matching the PyTorch AffineTransformationLayer.

    x:      (B, S, D) float32
    weight: (D, D)    float32  (PyTorch Linear weight; y = x @ weight.T + bias)
    bias:   (D,)      float32
    mask:   (B, S)    float/bool or None
    returns (B, D)    x.dtype
    """
    B, S, D = x.shape
    out_dtype = x.dtype
    mm_dtype = x.dtype if matmul_dtype is None else matmul_dtype
    mm_itemsize = jnp.dtype(mm_dtype).itemsize
    if act_dtype is None:
        act_dtype = _default_act_dtype() if mm_itemsize < 4 else jnp.float32
    act_itemsize = jnp.dtype(act_dtype).itemsize
    out_itemsize = jnp.dtype(out_dtype).itemsize

    # ---- generation-aware VMEM budgets --------------------------------------
    vmem_cap = _vmem_capacity_bytes()        # 64 MiB v7x, 128 MiB v5e/v6e
    vmem_limit_cap = int(vmem_cap * 0.8)     # leave compiler headroom
    x_block_budget = max(2 << 20, vmem_limit_cap // 8)   # ~6 MiB v7x, ~13 MiB v6e

    # ---- tiling geometry -----------------------------------------------------
    D_pad = _round_up(D, 128)                # lane-dense matmul + output stores
    S_al = _round_up(S, 16)                  # sublane / bf16-packing aligned
    B_al = _round_up(B, 8)

    # >=1024 LHS rows per step amortizes the per-step (D,D) MXU weight push;
    # `4*TB <= B_al` keeps >=2 batch blocks (v7x megacore) and avoids tiles
    # made purely of batch padding.
    TB = 8
    while TB * S_al < 1024 and TB < 128 and 4 * TB <= B_al:
        TB *= 2

    def _ts_cap(tb):                         # x tile sized for worst case (f32 x)
        return (x_block_budget // (tb * D_pad * 4)) // 128 * 128

    ts_cap = _ts_cap(TB)
    while ts_cap < 128 and TB > 8:           # guard the floor by shrinking TB
        TB //= 2
        ts_cap = _ts_cap(TB)
    ts_cap = max(ts_cap, 128)                # floor; real bytes counted below

    if S_al <= ts_cap:
        TS, S_pad = S_al, S_al               # single sequence step
    else:
        TS = ts_cap                          # multiple of 128 (and of 16)
        S_pad = _round_up(S, TS)
    B_pad = _round_up(B, TB)
    grid = (B_pad // TB, S_pad // TS)        # batch "parallel", seq "arbitrary"

    # ---- host-side glue -------------------------------------------------------
    # Only pad/cast x on the host when padding is genuinely needed; otherwise
    # keep x in HBM as-is and cast to mm_dtype inside the kernel.
    if (B_pad, S_pad, D_pad) != (B, S, D):
        xp = jnp.pad(x.astype(mm_dtype),
                     ((0, B_pad - B), (0, S_pad - S), (0, D_pad - D)))
    else:
        xp = x
    x_itemsize = jnp.dtype(xp.dtype).itemsize

    wt = jnp.pad(weight.T.astype(mm_dtype),
                 ((0, D_pad - D), (0, D_pad - D)))
    b2 = jnp.pad(bias.astype(jnp.float32), (0, D_pad - D)).reshape(1, D_pad)

    # vmem_limit from the actual residency (incl. the f32 matmul result and the
    # tanh intermediate), capped generation-aware.
    block_bytes = (2 * TB * TS * D_pad * x_itemsize     # x (double-buffered)
                   + D_pad * D_pad * mm_itemsize        # W.T (single-buffered)
                   + D_pad * 4                          # bias (single-buffered)
                   + TB * TS * D_pad * 4                # f32 matmul result
                   + TB * TS * D_pad * act_itemsize     # tanh intermediate
                   + 2 * TB * D_pad * out_itemsize      # out (double-buffered)
                   + 2 * TB * TS * 4                    # scaled mask tiles
                   + TB * D_pad * 4)                    # accumulator scratch
    vmem_limit = int(min(vmem_limit_cap,
                         max(32 << 20, block_bytes + (4 << 20))))

    out_shape = jax.ShapeDtypeStruct((B_pad, D_pad), out_dtype)
    cparams = pltpu.CompilerParams(
        dimension_semantics=("parallel", "arbitrary"),
        vmem_limit_bytes=vmem_limit)

    if mask is not None:
        mp = jnp.pad(mask.astype(jnp.float32), ((0, B_pad - B), (0, S_pad - S)))
        count = jnp.maximum(mp.sum(axis=1, keepdims=True), 1e-6)  # clamp(1e-6)
        mp = mp / count                       # mask pre-scaled by 1/count

    def _run(single_buffer_consts):
        if single_buffer_consts:
            # Constant index maps -> single-buffer to halve W's VMEM footprint.
            wt_spec = pl.BlockSpec((D_pad, D_pad), lambda b, s: (0, 0),
                                   pipeline_mode=pl.Buffered(1))
            b_spec = pl.BlockSpec((1, D_pad), lambda b, s: (0, 0),
                                  pipeline_mode=pl.Buffered(1))
        else:
            wt_spec = pl.BlockSpec((D_pad, D_pad), lambda b, s: (0, 0))
            b_spec = pl.BlockSpec((1, D_pad), lambda b, s: (0, 0))
        x_spec = pl.BlockSpec((TB, TS, D_pad), lambda b, s: (b, s, 0))
        out_spec = pl.BlockSpec((TB, D_pad), lambda b, s: (b, 0))
        scratch = [pltpu.VMEM((TB, D_pad), jnp.float32)]

        if mask is not None:
            kern = functools.partial(_masked_kernel, mm_dtype=mm_dtype,
                                     act_dtype=act_dtype)
            in_specs = [x_spec, wt_spec, b_spec,
                        pl.BlockSpec((TB, TS), lambda b, s: (b, s))]
            args = (xp, wt, b2, mp)
        else:
            kern = functools.partial(_mean_kernel, seq_len=S,
                                     mm_dtype=mm_dtype, act_dtype=act_dtype)
            in_specs = [x_spec, wt_spec, b_spec]
            args = (xp, wt, b2)

        return pl.pallas_call(
            kern,
            out_shape=out_shape,
            grid_spec=pltpu.PrefetchScalarGridSpec(
                num_scalar_prefetch=0,
                grid=grid,
                in_specs=in_specs,
                out_specs=out_spec,
                scratch_shapes=scratch),
            compiler_params=cparams,
        )(*args)

    try:
        out_pad = _run(True)
    except Exception:
        # Fallback for environments where pipeline_mode=pl.Buffered(1) on a
        # pallas_call BlockSpec is unsupported: plain double-buffered consts.
        out_pad = _run(False)

    return out_pad[:B, :D]


def _reference(x, weight, bias, mask=None):
    y = jnp.tanh(jnp.einsum("bsd,ed->bse", x, weight) + bias)
    if mask is not None:
        m = mask[..., None].astype(y.dtype)
        y = y * m
        sum_x = y.sum(axis=1)
        count = jnp.maximum(m.sum(axis=1), 1e-6)
        return sum_x / count
    return y.mean(axis=1)


if __name__ == "__main__":
    B, S, D = 2, 8, 32
    key = jax.random.PRNGKey(0)
    kx, kw, km = jax.random.split(key, 3)

    x = jax.random.normal(kx, (B, S, D), dtype=jnp.float32)

    # Deterministic params matching nn.Linear(D, D) with xavier_normal_ weight
    # and zero bias.
    xavier_std = (2.0 / (D + D)) ** 0.5
    weight = xavier_std * jax.random.normal(kw, (D, D), dtype=jnp.float32)
    bias = jnp.zeros((D,), dtype=jnp.float32)

    # 0/1 float mask (keep at least one valid position per row).
    mask = (jax.random.uniform(km, (B, S)) > 0.3).astype(jnp.float32)
    mask = mask.at[:, 0].set(1.0)

    # Masked path (bf16 MXU inputs -> loosened tolerance vs. f32 reference).
    out_masked = affine_transformation_layer(x, weight, bias, mask)
    jax.block_until_ready(out_masked)
    ref_masked = _reference(x, weight, bias, mask)
    assert out_masked.shape == (B, D)
    assert jnp.allclose(out_masked, ref_masked, atol=2e-2, rtol=2e-2), (
        float(jnp.max(jnp.abs(out_masked - ref_masked))))

    # No-mask path (mean over seq; no ones-mask DMA).
    out_mean = affine_transformation_layer(x, weight, bias, None)
    jax.block_until_ready(out_mean)
    ref_mean = _reference(x, weight, bias, None)
    assert jnp.allclose(out_mean, ref_mean, atol=2e-2, rtol=2e-2), (
        float(jnp.max(jnp.abs(out_mean - ref_mean))))

    print("KERNEL_OK")
</pallas_src>

<mosaic_0001>
module attributes {stable_mosaic.version = 11 : i64} {
  func.func @_masked_kernel(%arg0: i32, %arg1: i32, %arg2: memref<8x16x128xbf16, #tpu.memory_space<vmem>>, %arg3: memref<128x128xbf16, #tpu.memory_space<vmem>>, %arg4: memref<1x128xf32, #tpu.memory_space<vmem>>, %arg5: memref<8x16xf32, #tpu.memory_space<vmem>>, %arg6: memref<8x128xf32, #tpu.memory_space<vmem>>, %arg7: memref<8x128xf32, #tpu.memory_space<vmem>>) attributes {dimension_semantics = [#tpu.dimension_semantics<parallel>, #tpu.dimension_semantics<arbitrary>], iteration_bounds = array<i64: 1, 1>, scalar_prefetch = 0 : i64, scratch_operands = 1 : i64, tpu.core_type = #tpu.core_type<tc>, window_params = [{transform_indices = @transform_0, window_bounds = array<i64: 8, 16, 128>}, {pipeline_mode = #tpu.pipeline_mode<synchronous>, transform_indices = @transform_1, window_bounds = array<i64: 128, 128>}, {pipeline_mode = #tpu.pipeline_mode<synchronous>, transform_indices = @transform_2, window_bounds = array<i64: 1, 128>}, {transform_indices = @transform_3, window_bounds = array<i64: 8, 16>}, {transform_indices = @transform_4, window_bounds = array<i64: 8, 128>}]} {
    %c0 = arith.constant 0 : index
    %c0_0 = arith.constant 0 : index
    %0 = vector.load %arg5[%c0, %c0_0] : memref<8x16xf32, #tpu.memory_space<vmem>>, vector<8x16xf32>
    %c0_i32 = arith.constant 0 : i32
    %1 = arith.cmpi eq, %arg1, %c0_i32 : i32
    %2 = arith.extui %1 : i1 to i32
    %c0_i32_1 = arith.constant 0 : i32
    %3 = arith.cmpi ne, %2, %c0_i32_1 : i32
    scf.if %3 {
      %cst_16 = arith.constant 0.000000e+00 : f32
      %23 = vector.broadcast %cst_16 : f32 to vector<8x128xf32>
      %c0_17 = arith.constant 0 : index
      %c0_18 = arith.constant 0 : index
      %24 = vector.load %arg7[%c0_17, %c0_18] : memref<8x128xf32, #tpu.memory_space<vmem>>, vector<8x128xf32>
      tpu.vector_store %arg7[%c0_17, %c0_18], %23 {strides = array<i32>} : memref<8x128xf32, #tpu.memory_space<vmem>>, vector<8x128xf32>,
    } else {
    }
    %c0_2 = arith.constant 0 : index
    %c0_3 = arith.constant 0 : index
    %c0_4 = arith.constant 0 : index
    %4 = vector.load %arg2[%c0_2, %c0_3, %c0_4] : memref<8x16x128xbf16, #tpu.memory_space<vmem>>, vector<8x16x128xbf16>
    %5 = vector.shape_cast %4 : vector<8x16x128xbf16> to vector<128x128xbf16>
    %c0_5 = arith.constant 0 : index
    %c0_6 = arith.constant 0 : index
    %6 = vector.load %arg3[%c0_5, %c0_6] : memref<128x128xbf16, #tpu.memory_space<vmem>>, vector<128x128xbf16>
    %cst = arith.constant dense<0.000000e+00> : vector<128x128xf32>
    %7 = tpu.matmul %5, %6, %cst {dimension_numbers = #tpu.dot_dimension_numbers<[1], [0], [0], [1], [0, 0, 1, 1], [], []>} : vector<128x128xbf16>, vector<128x128xbf16>, vector<128x128xf32> -> vector<128x128xf32>
    %c0_7 = arith.constant 0 : index
    %c0_8 = arith.constant 0 : index
    %8 = vector.load %arg4[%c0_7, %c0_8] : memref<1x128xf32, #tpu.memory_space<vmem>>, vector<1x128xf32>
    %9 = vector.broadcast %8 : vector<1x128xf32> to vector<128x128xf32>
    %10 = arith.addf %7, %9 : vector<128x128xf32>
    %11 = math.tanh %10 : vector<128x128xf32>
    %12 = vector.shape_cast %11 : vector<128x128xf32> to vector<8x16x128xf32>
    %c0_9 = arith.constant 0 : index
    %c0_10 = arith.constant 0 : index
    %13 = vector.load %arg7[%c0_9, %c0_10] : memref<8x128xf32, #tpu.memory_space<vmem>>, vector<8x128xf32>
    %14 = vector.shape_cast %0 : vector<8x16xf32> to vector<8x16x1xf32>
    %15 = vector.broadcast %14 : vector<8x16x1xf32> to vector<8x16x128xf32>
    %16 = arith.mulf %12, %15 : vector<8x16x128xf32>
    %cst_11 = arith.constant dense<0.000000e+00> : vector<8x128xf32>
    %17 = vector.multi_reduction <add>, %16, %cst_11 [1] : vector<8x16x128xf32> to vector<8x128xf32>
    %18 = arith.addf %13, %17 : vector<8x128xf32>
    %c0_12 = arith.constant 0 : index
    %c0_13 = arith.constant 0 : index
    %19 = vector.load %arg7[%c0_12, %c0_13] : memref<8x128xf32, #tpu.memory_space<vmem>>, vector<8x128xf32>
    tpu.vector_store %arg7[%c0_12, %c0_13], %18 {strides = array<i32>} : memref<8x128xf32, #tpu.memory_space<vmem>>, vector<8x128xf32>,
    %c0_i32_14 = arith.constant 0 : i32
    %20 = arith.cmpi eq, %arg1, %c0_i32_14 : i32
    %21 = arith.extui %20 : i1 to i32
    %c0_i32_15 = arith.constant 0 : i32
    %22 = arith.cmpi ne, %21, %c0_i32_15 : i32
    scf.if %22 {
      %c0_16 = arith.constant 0 : index
      %c0_17 = arith.constant 0 : index
      %23 = vector.load %arg7[%c0_16, %c0_17] : memref<8x128xf32, #tpu.memory_space<vmem>>, vector<8x128xf32>
      %c0_18 = arith.constant 0 : index
      %c0_19 = arith.constant 0 : index
      %24 = vector.load %arg6[%c0_18, %c0_19] : memref<8x128xf32, #tpu.memory_space<vmem>>, vector<8x128xf32>
      tpu.vector_store %arg6[%c0_18, %c0_19], %23 {strides = array<i32>} : memref<8x128xf32, #tpu.memory_space<vmem>>, vector<8x128xf32>,
    } else {
    }
    return
  }
  func.func @transform_0(%arg0: i32, %arg1: i32) -> (i32, i32, i32) {
    %c0_i32 = arith.constant 0 : i32
    %c0_i32_0 = arith.constant 0 : i32
    return %arg0, %arg1, %c0_i32 : i32, i32, i32
  }
  func.func @transform_1(%arg0: i32, %arg1: i32) -> (i32, i32) {
    %c0_i32 = arith.constant 0 : i32
    %c0_i32_0 = arith.constant 0 : i32
    %c0_i32_1 = arith.constant 0 : i32
    return %c0_i32, %c0_i32_0 : i32, i32
  }
  func.func @transform_2(%arg0: i32, %arg1: i32) -> (i32, i32) {
    %c0_i32 = arith.constant 0 : i32
    %c0_i32_0 = arith.constant 0 : i32
    %c0_i32_1 = arith.constant 0 : i32
    return %c0_i32, %c0_i32_0 : i32, i32
  }
  func.func @transform_3(%arg0: i32, %arg1: i32) -> (i32, i32) {
    %c0_i32 = arith.constant 0 : i32
    return %arg0, %arg1 : i32, i32
  }
  func.func @transform_4(%arg0: i32, %arg1: i32) -> (i32, i32) {
    %c0_i32 = arith.constant 0 : i32
    %c0_i32_0 = arith.constant 0 : i32
    return %arg0, %c0_i32 : i32, i32
  }
}

module attributes {stable_mosaic.version = 11 : i64} {
  func.func @_masked_kernel(%arg0: i32, %arg1: i32, %arg2: memref<8x16x128xbf16, #tpu.memory_space<vmem>>, %arg3: memref<128x128xbf16, #tpu.memory_space<vmem>>, %arg4: memref<1x128xf32, #tpu.memory_space<vmem>>, %arg5: memref<8x16xf32, #tpu.memory_space<vmem>>, %arg6: memref<8x128xf32, #tpu.memory_space<vmem>>, %arg7: memref<8x128xf32, #tpu.memory_space<vmem>>) attributes {dimension_semantics = [#tpu.dimension_semantics<parallel>, #tpu.dimension_semantics<arbitrary>], iteration_bounds = array<i64: 1, 1>, scalar_prefetch = 0 : i64, scratch_operands = 1 : i64, tpu.core_type = #tpu.core_type<tc>, window_params = [{transform_indices = @transform_0, window_bounds = array<i64: 8, 16, 128>}, {pipeline_mode = #tpu.pipeline_mode<synchronous>, transform_indices = @transform_1, window_bounds = array<i64: 128, 128>}, {pipeline_mode = #tpu.pipeline_mode<synchronous>, transform_indices = @transform_2, window_bounds = array<i64: 1, 128>}, {transform_indices = @transform_3, window_bounds = array<i64: 8, 16>}, {transform_indices = @transform_4, window_bounds = array<i64: 8, 128>}]} {
    %c0 = arith.constant 0 : index
    %c0_0 = arith.constant 0 : index
    %0 = vector.load %arg5[%c0, %c0_0] : memref<8x16xf32, #tpu.memory_space<vmem>>, vector<8x16xf32>
    %c0_i32 = arith.constant 0 : i32
    %1 = arith.cmpi eq, %arg1, %c0_i32 : i32
    %2 = arith.extui %1 : i1 to i32
    %c0_i32_1 = arith.constant 0 : i32
    %3 = arith.cmpi ne, %2, %c0_i32_1 : i32
    scf.if %3 {
      %cst_16 = arith.constant 0.000000e+00 : f32
      %23 = vector.broadcast %cst_16 : f32 to vector<8x128xf32>
      %c0_17 = arith.constant 0 : index
      %c0_18 = arith.constant 0 : index
      %24 = vector.load %arg7[%c0_17, %c0_18] : memref<8x128xf32, #tpu.memory_space<vmem>>, vector<8x128xf32>
      tpu.vector_store %arg7[%c0_17, %c0_18], %23 {strides = array<i32>} : memref<8x128xf32, #tpu.memory_space<vmem>>, vector<8x128xf32>,
    } else {
    }
    %c0_2 = arith.constant 0 : index
    %c0_3 = arith.constant 0 : index
    %c0_4 = arith.constant 0 : index
    %4 = vector.load %arg2[%c0_2, %c0_3, %c0_4] : memref<8x16x128xbf16, #tpu.memory_space<vmem>>, vector<8x16x128xbf16>
    %5 = vector.shape_cast %4 : vector<8x16x128xbf16> to vector<128x128xbf16>
    %c0_5 = arith.constant 0 : index
    %c0_6 = arith.constant 0 : index
    %6 = vector.load %arg3[%c0_5, %c0_6] : memref<128x128xbf16, #tpu.memory_space<vmem>>, vector<128x128xbf16>
    %cst = arith.constant dense<0.000000e+00> : vector<128x128xf32>
    %7 = tpu.matmul %5, %6, %cst {dimension_numbers = #tpu.dot_dimension_numbers<[1], [0], [0], [1], [0, 0, 1, 1], [], []>} : vector<128x128xbf16>, vector<128x128xbf16>, vector<128x128xf32> -> vector<128x128xf32>
    %c0_7 = arith.constant 0 : index
    %c0_8 = arith.constant 0 : index
    %8 = vector.load %arg4[%c0_7, %c0_8] : memref<1x128xf32, #tpu.memory_space<vmem>>, vector<1x128xf32>
    %9 = vector.broadcast %8 : vector<1x128xf32> to vector<128x128xf32>
    %10 = arith.addf %7, %9 : vector<128x128xf32>
    %11 = math.tanh %10 : vector<128x128xf32>
    %12 = vector.shape_cast %11 : vector<128x128xf32> to vector<8x16x128xf32>
    %c0_9 = arith.constant 0 : index
    %c0_10 = arith.constant 0 : index
    %13 = vector.load %arg7[%c0_9, %c0_10] : memref<8x128xf32, #tpu.memory_space<vmem>>, vector<8x128xf32>
    %14 = vector.shape_cast %0 : vector<8x16xf32> to vector<8x16x1xf32>
    %15 = vector.broadcast %14 : vector<8x16x1xf32> to vector<8x16x128xf32>
    %16 = arith.mulf %12, %15 : vector<8x16x128xf32>
    %cst_11 = arith.constant dense<0.000000e+00> : vector<8x128xf32>
    %17 = vector.multi_reduction <add>, %16, %cst_11 [1] : vector<8x16x128xf32> to vector<8x128xf32>
    %18 = arith.addf %13, %17 : vector<8x128xf32>
    %c0_12 = arith.constant 0 : index
    %c0_13 = arith.constant 0 : index
    %19 = vector.load %arg7[%c0_12, %c0_13] : memref<8x128xf32, #tpu.memory_space<vmem>>, vector<8x128xf32>
    tpu.vector_store %arg7[%c0_12, %c0_13], %18 {strides = array<i32>} : memref<8x128xf32, #tpu.memory_space<vmem>>, vector<8x128xf32>,
    %c0_i32_14 = arith.constant 0 : i32
    %20 = arith.cmpi eq, %arg1, %c0_i32_14 : i32
    %21 = arith.extui %20 : i1 to i32
    %c0_i32_15 = arith.constant 0 : i32
    %22 = arith.cmpi ne, %21, %c0_i32_15 : i32
    scf.if %22 {
      %c0_16 = arith.constant 0 : index
      %c0_17 = arith.constant 0 : index
      %23 = vector.load %arg7[%c0_16, %c0_17] : memref<8x128xf32, #tpu.memory_space<vmem>>, vector<8x128xf32>
      %c0_18 = arith.constant 0 : index
      %c0_19 = arith.constant 0 : index
      %24 = vector.load %arg6[%c0_18, %c0_19] : memref<8x128xf32, #tpu.memory_space<vmem>>, vector<8x128xf32>
      tpu.vector_store %arg6[%c0_18, %c0_19], %23 {strides = array<i32>} : memref<8x128xf32, #tpu.memory_space<vmem>>, vector<8x128xf32>,
    } else {
    }
    return
  }
  func.func @transform_0(%arg0: i32, %arg1: i32) -> (i32, i32, i32) {
    %c0_i32 = arith.constant 0 : i32
    %c0_i32_0 = arith.constant 0 : i32
    return %arg0, %arg1, %c0_i32 : i32, i32, i32
  }
  func.func @transform_1(%arg0: i32, %arg1: i32) -> (i32, i32) {
    %c0_i32 = arith.constant 0 : i32
    %c0_i32_0 = arith.constant 0 : i32
    %c0_i32_1 = arith.constant 0 : i32
    return %c0_i32, %c0_i32_0 : i32, i32
  }
  func.func @transform_2(%arg0: i32, %arg1: i32) -> (i32, i32) {
    %c0_i32 = arith.constant 0 : i32
    %c0_i32_0 = arith.constant 0 : i32
    %c0_i32_1 = arith.constant 0 : i32
    return %c0_i32, %c0_i32_0 : i32, i32
  }
  func.func @transform_3(%arg0: i32, %arg1: i32) -> (i32, i32) {
    %c0_i32 = arith.constant 0 : i32
    return %arg0, %arg1 : i32, i32
  }
  func.func @transform_4(%arg0: i32, %arg1: i32) -> (i32, i32) {
    %c0_i32 = arith.constant 0 : i32
    %c0_i32_0 = arith.constant 0 : i32
    return %arg0, %c0_i32 : i32, i32
  }
}

</mosaic_0001>

<bundles_post_ra>
// kernel: tpu_custom_call.1
= control target key start
LH: loop header
LB: loop body
LE: loop exit
PB: predicated region body
PF: predicated region fallthrough
CT: control target
= control target key end

     0   :  { %9 = vsyncpa [#allocation4], 0  ;;  %s823_s0 = inlined_call_operand.hbm [shape: bf16[8,16,128], index: 0, kind: input, shape index: {}]   ;;  %s824_s1 = inlined_call_operand.hbm [shape: bf16[128,128], index: 1, kind: input, shape index: {}]   ;;  %s825_s2 = inlined_call_operand.vmem [shape: f32[1,128], index: 2, kind: input, shape index: {}]   ;;  %s826_s3 = inlined_call_operand.vmem [shape: f32[8,16], index: 3, kind: input, shape index: {}]   ;;  %s827_s4 = inlined_call_operand.hbm [shape: f32[8,128], index: 4, kind: output, shape index: {}]  }
   0x1   :  { %10 = vsyncpa [#allocation7], 0 }
   0x2   :  { %11 = vsyncpa [#allocation5], 0  ;;  %s714_s15 = smov [#allocation3]   ;;  %s642_s19 = scalar_lea.hbm %s823_s0, 1024 }
   0x3   :  { %s17_s16 = sshll.u32 %s714_s15, 4  ;;  %p643_p0 = scmp.ne.s32.totalorder %s823_s0, %s642_s19  ;;  %s18_s16 = int_to_ptr.vmem [resolvable:$true] %s17_s16 }
   0x4   :  { %p646_p1 = scmp.lt.u32.totalorder %s642_s19, %s823_s0 }
   0x6   :  { %p648_p2 = pnand %p646_p1, %p643_p0 }
   0x8   :  { %651 = shalt.err (!%p648_p2)
}
   0x9   :  { %s652_s24 = scalar_lea.vmem %s18_s16, 1024  ;;  %p657_p4 = scmp.lt.s32.totalorder %s18_s16, %s18_s16 }
   0xa   :  { %p653_p3 = scmp.ne.s32.totalorder %s18_s16, %s652_s24  ;;  %p658_p5 = scmp.lt.s32.totalorder %s652_s24, %s652_s24 }
   0xc   :  { %p659_p6 = por %p658_p5, %p657_p4 }
   0xe   :  { %p660_p7 = pnand %p659_p6, %p653_p3 }
  0x10   :  { %663 = shalt.err (!%p660_p7)
}
  0x11   :  { %s715_s25 = smov 64   ;;  %s716_s26 = smov 4  }
  0x12   :  { %23 = dma.hbm_to_vmem [thread:$0]  %s823_s0, 1024, %s18_s16, [#allocation4], %s715_s25, %s715_s25, %s716_s26  }
  0x13   :  { %s717_s29 = smov [#allocation6]   ;;  %s664_s7 = scalar_lea.hbm %s824_s1, 1024 }
  0x14   :  { %s29_s30 = sshll.u32 %s717_s29, 4  ;;  %p665_p8 = scmp.ne.s32.totalorder %s824_s1, %s664_s7  ;;  %s30_s30 = int_to_ptr.vmem [resolvable:$true] %s29_s30 }
  0x15   :  { %p668_p9 = scmp.lt.u32.totalorder %s664_s7, %s824_s1 }
  0x17   :  { %p670_p10 = pnand %p668_p9, %p665_p8 }
  0x19   :  { %673 = shalt.err (!%p670_p10)
}
  0x1a   :  { %s674_s12 = scalar_lea.vmem %s30_s30, 1024  ;;  %p679_p12 = scmp.lt.s32.totalorder %s30_s30, %s30_s30 }
  0x1b   :  { %p675_p11 = scmp.ne.s32.totalorder %s30_s30, %s674_s12  ;;  %p680_p13 = scmp.lt.s32.totalorder %s674_s12, %s674_s12 }
  0x1d   :  { %p681_p0 = por %p680_p13, %p679_p12 }
  0x1f   :  { %p682_p1 = pnand %p681_p0, %p675_p11 }
  0x21   :  { %685 = shalt.err (!%p682_p1)
}
  0x22   :  { %35 = dma.hbm_to_vmem [thread:$0]  %s824_s1, 1024, %s30_s30, [#allocation7], %s715_s25, %s715_s25, %s716_s26  }
  0x23   :  { %708 = dma.done.wait [#allocation4], 1024  }
  0x24   :  { %709 = vsyncadd [#allocation4], 4294966272 }
  0x25   :  { %710 = dma.done.wait [#allocation7], 1024  }
  0x26   :  { %711 = vsyncadd [#allocation7], 4294966272  ;;  %v594_v0 = vld [vmem:[#allocation6] sm:$0xff]   ;;  %v595_v1 = vld [vmem:[#allocation6 + $0x8] sm:$0xff]   ;;  %v302_v3 = vlaneseq  ;;  %vm470_vm0 = vcmask 1041409   ;;  %vm472_vm1 = vcmask 1042434  }
  0x27   :  { %541 = vmatprep.subr.bf16.mxu0 %v594_v0  ;;  %573 = vmatprep.subr.bf16.mxu1 %v594_v0  ;;  %v596_v2 = vld [vmem:[#allocation6 + $0x10] sm:$0xff]   ;;  %v597_v4 = vld [vmem:[#allocation6 + $0x18] sm:$0xff]   ;;  %v602_v5 = vld [vmem:[#allocation3] sm:$0xff]   ;;  %vm474_vm2 = vcmask 1043459   ;;  %vm476_vm3 = vcmask 1044484   ;;  %vm478_vm4 = vcmask 1045509  }
  0x28   :  { %542 = vmatpush3.bf16.msra.mxu0 %v594_v0  ;;  %581 = vmatpush3.bf16.msra.mxu1 %v594_v0  ;;  %v603_v6 = vld [vmem:[#allocation3 + $0x20] sm:$0xff]   ;;  %v768_v7 = vshrl.u32 %v302_v3, 7  ;;  %v599_v11 = vld [vmem:[#allocation6 + $0x28] sm:$0xff]   ;;  %v600_v15 = vld [vmem:[#allocation6 + $0x30] sm:$0xff]   ;;  %vm480_vm5 = vcmask 1046534   ;;  %vm482_vm6 = vcmask 1047559  }
  0x29   :  { %543 = vmatprep.subr.bf16.mxu0 %v595_v1  ;;  %574 = vmatprep.subr.bf16.mxu1 %v595_v1  ;;  %v598_v8 = vld [vmem:[#allocation6 + $0x20] sm:$0xff]   ;;  %v601_v17 = vld [vmem:[#allocation6 + $0x38] sm:$0xff]   ;;  %v604_v22 = vld [vmem:[#allocation3 + $0x8] sm:$0xff]  }
  0x2a   :  { %557 = vmatprep.mubr.bf16.mxu0 %v602_v5  ;;  %565 = vmatprep.mubr.bf16.mxu1 %v603_v6  ;;  %v315_v9 = vsub.s32 1, %v768_v7  ;;  %v304_v10 = vsub.s32 0, %v768_v7  ;;  %v47_v12 = vld [vmem:[%s826_s3] sm:$0xff]  ;;  %v326_v16 = vsub.s32 2, %v768_v7  ;;  %v337_v19 = vsub.s32 3, %v768_v7  ;;  %v605_v23 = vld [vmem:[#allocation3 + $0x28] sm:$0xff]  }
  0x2b   :  { %v348_v21 = vsub.s32 4, %v768_v7  ;;  %v606_v24 = vld [vmem:[#allocation3 + $0x10] sm:$0xff]   ;;  %v359_v27 = vsub.s32 5, %v768_v7  ;;  %v370_v29 = vsub.s32 6, %v768_v7  ;;  %v608_v30 = vld [vmem:[#allocation3 + $0x18] sm:$0xff]   ;;  %v381_v33 = vsub.s32 7, %v768_v7 }
  0x2c   :  { %544 = vmatpush3.bf16.msra.mxu0 %v595_v1  ;;  %582 = vmatpush3.bf16.msra.mxu1 %v595_v1  ;;  %v316_v13 = vrot.slane %v47_v12, %v315_v9  ;;  %v305_v14 = vrot.slane %v47_v12, %v304_v10  ;;  %v327_v18 = vrot.slane %v47_v12, %v326_v16  ;;  %v607_v25 = vld [vmem:[#allocation3 + $0x30] sm:$0xff]   ;;  %v609_v31 = vld [vmem:[#allocation3 + $0x38] sm:$0xff]   ;;  %v508_v42 = vld [vmem:[%s825_s2] ss:$0 sm:$0xff]  ;;  %s718_s2 = smov [#allocation8]  }
  0x2d   :  { %545 = vmatprep.subr.bf16.mxu0 %v596_v2  ;;  %575 = vmatprep.subr.bf16.mxu1 %v596_v2  ;;  %v338_v20 = vrot.slane %v47_v12, %v337_v19  ;;  %v349_v26 = vrot.slane %v47_v12, %v348_v21  ;;  %v360_v28 = vrot.slane %v47_v12, %v359_v27  ;;  %s498_s16 = sshll.u32 %s718_s2, 4  ;;  %s499_s16 = int_to_ptr.vmem [resolvable:$true] %s498_s16 }
  0x2e   :  { %318 = vbcast.lane.b32.xlu1 %v316_v13, 256  ;;  %307 = vbcast.lane.b32.xlu0 %v305_v14, 256  ;;  %v371_v32 = vrot.slane %v47_v12, %v370_v29  ;;  %v382_v34 = vrot.slane %v47_v12, %v381_v33  ;;  %s686_s17 = scalar_lea.vmem %s499_s16, 128  ;;  %p691_p3 = scmp.lt.s32.totalorder %s499_s16, %s499_s16 }
  0x2f   :  { %p687_p2 = scmp.ne.s32.totalorder %s499_s16, %s686_s17  ;;  %p692_p4 = scmp.lt.s32.totalorder %s686_s17, %s686_s17 }
  0x30   :  { %546 = vmatpush3.bf16.msra.mxu0 %v596_v2  ;;  %583 = vmatpush3.bf16.msra.mxu1 %v596_v2 }
  0x31   :  { %547 = vmatprep.subr.bf16.mxu0 %v597_v4  ;;  %576 = vmatprep.subr.bf16.mxu1 %v597_v4  ;;  %p693_p5 = por %p692_p4, %p691_p3 }
  0x32   :  { %322 = vbcast.lane.b32.xlu1 %v316_v13, 264  ;;  %311 = vbcast.lane.b32.xlu0 %v305_v14, 264 }
  0x33   :  { %p694_p6 = pnand %p693_p5, %p687_p2 }
  0x34   :  { %548 = vmatpush3.bf16.msra.mxu0 %v597_v4  ;;  %584 = vmatpush3.bf16.msra.mxu1 %v597_v4 }
  0x35   :  { %549 = vmatprep.subr.bf16.mxu0 %v598_v8  ;;  %577 = vmatprep.subr.bf16.mxu1 %v598_v8 }
  0x36   :  { %333 = vbcast.lane.b32.xlu1 %v327_v18, 264  ;;  %329 = vbcast.lane.b32.xlu0 %v327_v18, 256 }
  0x38   :  { %550 = vmatpush3.bf16.msra.mxu0 %v598_v8  ;;  %585 = vmatpush3.bf16.msra.mxu1 %v598_v8 }
  0x39   :  { %551 = vmatprep.subr.bf16.mxu0 %v599_v11  ;;  %578 = vmatprep.subr.bf16.mxu1 %v599_v11 }
  0x3a   :  { %344 = vbcast.lane.b32.xlu1 %v338_v20, 264  ;;  %340 = vbcast.lane.b32.xlu0 %v338_v20, 256 }
  0x3c   :  { %552 = vmatpush3.bf16.msra.mxu0 %v599_v11  ;;  %586 = vmatpush3.bf16.msra.mxu1 %v599_v11 }
  0x3d   :  { %553 = vmatprep.subr.bf16.mxu0 %v600_v15  ;;  %579 = vmatprep.subr.bf16.mxu1 %v600_v15 }
  0x3e   :  { %355 = vbcast.lane.b32.xlu1 %v349_v26, 264  ;;  %351 = vbcast.lane.b32.xlu0 %v349_v26, 256 }
  0x40   :  { %554 = vmatpush3.bf16.msra.mxu0 %v600_v15  ;;  %587 = vmatpush3.bf16.msra.mxu1 %v600_v15 }
  0x41   :  { %555 = vmatprep.subr.bf16.mxu0 %v601_v17  ;;  %580 = vmatprep.subr.bf16.mxu1 %v601_v17 }
  0x42   :  { %366 = vbcast.lane.b32.xlu1 %v360_v28, 264  ;;  %362 = vbcast.lane.b32.xlu0 %v360_v28, 256 }
  0x44   :  { %556 = vmatpush3.bf16.msra.mxu0 %v601_v17  ;;  %588 = vmatpush3.bf16.msra.mxu1 %v601_v17 }
  0x46   :  { %377 = vbcast.lane.b32.xlu1 %v371_v32, 264  ;;  %373 = vbcast.lane.b32.xlu0 %v371_v32, 256 }
  0x47   :  { %558 = vmatmul.mubr.bf16.vlgmr.msra.gmra.mrb[0].mxu0 %v604_v22  ;;  %566 = vmatmul.mubr.bf16.vlgmr.msra.gmra.mrb[0].mxu1 %v605_v23 }
  0x48   :  { %561 = vmatprep.mubr.bf16.mxu0 %v606_v24  ;;  %569 = vmatprep.mubr.bf16.mxu1 %v607_v25 }
  0x4a   :  { %388 = vbcast.lane.b32.xlu1 %v382_v34, 264  ;;  %384 = vbcast.lane.b32.xlu0 %v382_v34, 256 }
  0x4f   :  { %562 = vmatmul.mubr.bf16.gmra.mrb[4].mxu0 %v608_v30  ;;  %570 = vmatmul.mubr.bf16.gmra.mrb[4].mxu1 %v609_v31 }
  0xa0   :  { %v781_v35 = vpop.permute.xlu0 %307  ;;  %v783_v36 = vpop.permute.xlu1 %318 }
  0xa4   :  { %v785_v37 = vpop.permute.xlu0 %311  ;;  %v787_v38 = vpop.permute.xlu1 %322 }
  0xa8   :  { %v789_v39 = vpop.permute.xlu0 %329  ;;  %v791_v40 = vpop.permute.xlu1 %333 }
  0xac   :  { %v793_v41 = vpop.permute.xlu0 %340  ;;  %v798_v43 = vpop.permute.xlu1 %344 }
  0xb0   :  { %v800_v44 = vpop.permute.xlu0 %351  ;;  %v356_v61 = vpop.permute.xlu1 %355 }
  0xb4   :  { %v363_v62 = vpop.permute.xlu0 %362  ;;  %v367_v13 = vpop.permute.xlu1 %366 }
  0xb8   :  { %v374_v20 = vpop.permute.xlu0 %373  ;;  %v378_v26 = vpop.permute.xlu1 %377 }
 0x11a   :  { %v559_v45 = vpop.f32.mrb[0].mxu0  ;;  %v567_v46 = vpop.f32.mrb[0].mxu1 }
 0x11b   :  { %v231_v47 = vadd.f32 %v559_v45, %v508_v42  ;;  %v263_v48 = vadd.f32 %v567_v46, %v508_v42  ;;  %v222_v49 = vpop.f32.mrb[1].mxu0  ;;  %v254_v50 = vpop.f32.mrb[1].mxu1 }
 0x11c   :  { %v223_v51 = vadd.f32 %v508_v42, %v222_v49  ;;  %v255_v52 = vadd.f32 %v508_v42, %v254_v50  ;;  %v560_v53 = vpop.f32.mrb[2].mxu0  ;;  %v568_v54 = vpop.f32.mrb[2].mxu1 }
 0x11d   :  { %610 = vtanh.f32 %v231_v47  ;;  %v234_v55 = vadd.f32 %v560_v53, %v508_v42  ;;  %v225_v56 = vpop.f32.mrb[3].mxu0  ;;  %v257_v57 = vpop.f32.mrb[3].mxu1  ;;  %v266_v58 = vadd.f32 %v568_v54, %v508_v42 }
 0x11e   :  { %612 = vtanh.f32 %v263_v48  ;;  %v226_v59 = vadd.f32 %v508_v42, %v225_v56  ;;  %v258_v60 = vadd.f32 %v508_v42, %v257_v57  ;;  %v385_v48 = vpop.permute.xlu0 %384 }
 0x11f   :  { %614 = vtanh.f32 %v223_v51 }
 0x120   :  { %616 = vtanh.f32 %v255_v52 }
 0x121   :  { %618 = vtanh.f32 %v234_v55 }
 0x122   :  { %620 = vtanh.f32 %v266_v58  ;;  %v563_v63 = vpop.f32.mrb[4].mxu0  ;;  %v571_v0 = vpop.f32.mrb[4].mxu1 }
 0x123   :  { %622 = vtanh.f32 %v226_v59  ;;  %v247_v1 = vadd.f32 %v563_v63, %v508_v42  ;;  %v279_v2 = vadd.f32 %v571_v0, %v508_v42  ;;  %v238_v3 = vpop.f32.mrb[5].mxu0  ;;  %v270_v4 = vpop.f32.mrb[5].mxu1 }
 0x124   :  { %624 = vtanh.f32 %v258_v60  ;;  %v239_v5 = vadd.f32 %v508_v42, %v238_v3  ;;  %v271_v6 = vadd.f32 %v508_v42, %v270_v4  ;;  %v564_v7 = vpop.f32.mrb[6].mxu0  ;;  %v572_v8 = vpop.f32.mrb[6].mxu1 }
 0x125   :  { %626 = vtanh.f32 %v247_v1  ;;  %v250_v9 = vadd.f32 %v564_v7, %v508_v42  ;;  %v241_v10 = vpop.f32.mrb[7].mxu0  ;;  %v273_v11 = vpop.f32.mrb[7].mxu1  ;;  %v282_v12 = vadd.f32 %v572_v8, %v508_v42 }
 0x126   :  { %628 = vtanh.f32 %v279_v2  ;;  %v242_v15 = vadd.f32 %v508_v42, %v241_v10  ;;  %v274_v17 = vadd.f32 %v508_v42, %v273_v11 }
 0x127   :  { %v611_v14 = vpop.eup %610  ;;  %630 = vtanh.f32 %v239_v5 }
 0x128   :  { %v613_v16 = vpop.eup %612  ;;  %632 = vtanh.f32 %v271_v6  ;;  %v392_v24 = vmul.f32 %v611_v14, %v783_v36 }
 0x129   :  { %v615_v18 = vpop.eup %614  ;;  %634 = vtanh.f32 %v250_v9  ;;  %v400_v22 = vmul.f32 %v613_v16, %v363_v62 }
 0x12a   :  { %v617_v19 = vpop.eup %616  ;;  %636 = vtanh.f32 %v282_v12  ;;  %v390_v31 = vmul.f32 %v615_v18, %v781_v35 }
 0x12b   :  { %v619_v21 = vpop.eup %618  ;;  %638 = vtanh.f32 %v242_v15  ;;  %v398_v28 = vmul.f32 %v617_v19, %v800_v44  ;;  %v389_v44 = vpop.permute.xlu1 %388 }
 0x12c   :  { %v621_v23 = vpop.eup %620  ;;  %v393_v25 = vmul.f32 %v619_v21, %v787_v38  ;;  %640 = vtanh.f32 %v274_v17 }
 0x12d   :  { %v623_v27 = vpop.eup %622  ;;  %v401_v29 = vmul.f32 %v621_v23, %v367_v13 }
 0x12e   :  { %v625_v30 = vpop.eup %624  ;;  %v413_v32 = vadd.f32 %v393_v25, %v392_v24  ;;  %v391_v33 = vmul.f32 %v623_v27, %v785_v37 }
 0x12f   :  { %v627_v34 = vpop.eup %626  ;;  %v399_v42 = vmul.f32 %v625_v30, %v356_v61  ;;  %v441_v45 = vadd.f32 %v401_v29, %v400_v22 }
 0x130   :  { %v629_v46 = vpop.eup %628  ;;  %v414_v47 = vrot.slane %v413_v32, 4  ;;  %v406_v36 = vadd.f32 %v391_v33, %v390_v31  ;;  %v396_v58 = vmul.f32 %v627_v34, %v793_v41 }
 0x131   :  { %v631_v38 = vpop.eup %630  ;;  %v434_v49 = vadd.f32 %v399_v42, %v398_v28  ;;  %v442_v55 = vrot.slane %v441_v45, 4  ;;  %v404_v35 = vmul.f32 %v629_v46, %v385_v48 }
 0x132   :  { %v633_v50 = vpop.eup %632  ;;  %v415_v51 = vadd.f32 %v414_v47, %v413_v32  ;;  %v407_v52 = vrot.slane %v406_v36, 4  ;;  %v394_v61 = vmul.f32 %v631_v38, %v789_v39 }
 0x133   :  { %v635_v53 = vpop.eup %634  ;;  %v435_v54 = vrot.slane %v434_v49, 4  ;;  %v402_v63 = vmul.f32 %v633_v50, %v374_v20  ;;  %v443_v6 = vadd.f32 %v442_v55, %v441_v45 }
 0x134   :  { %v637_v56 = vpop.eup %636  ;;  %v416_v57 = vrot.slane %v415_v51, 2  ;;  %v408_v37 = vadd.f32 %v407_v52, %v406_v36  ;;  %v397_v59 = vmul.f32 %v635_v53, %v798_v43 }
 0x135   :  { %v639_v60 = vpop.eup %638  ;;  %v436_v62 = vadd.f32 %v435_v54, %v434_v49  ;;  %v405_v0 = vmul.f32 %v637_v56, %v389_v44  ;;  %v444_v17 = vrot.slane %v443_v6, 2 }
 0x136   :  { %v641_v1 = vpop.eup %640  ;;  %v417_v2 = vadd.f32 %v416_v57, %v415_v51  ;;  %v409_v3 = vrot.slane %v408_v37, 2  ;;  %v427_v4 = vadd.f32 %v397_v59, %v396_v58  ;;  %v395_v5 = vmul.f32 %v639_v60, %v791_v40 }
 0x137   :  { %v403_v7 = vmul.f32 %v641_v1, %v378_v26  ;;  %v455_v8 = vadd.f32 %v405_v0, %v404_v35  ;;  %v437_v43 = vrot.slane %v436_v62, 2  ;;  %v445_v28 = vadd.f32 %v444_v17, %v443_v6 }
 0x138   :  { %v418_v9 = vrot.slane %v417_v2, 1  ;;  %v410_v10 = vadd.f32 %v409_v3, %v408_v37  ;;  %v428_v41 = vrot.slane %v427_v4, 4  ;;  %v420_v11 = vadd.f32 %v395_v5, %v394_v61 }
 0x139   :  { %v448_v12 = vadd.f32 %v403_v7, %v402_v63  ;;  %v456_v13 = vrot.slane %v455_v8, 4  ;;  %v438_v26 = vadd.f32 %v437_v43, %v436_v62  ;;  %v446_v45 = vrot.slane %v445_v28, 1 }
 0x13a   :  { %v419_v39 = vadd.f32 %v418_v9, %v417_v2  ;;  %v411_v14 = vrot.slane %v410_v10, 1  ;;  %v429_v15 = vadd.f32 %v428_v41, %v427_v4  ;;  %v421_v16 = vrot.slane %v420_v11, 4 }
 0x13b   :  { %v449_v18 = vrot.slane %v448_v12, 4  ;;  %v457_v19 = vadd.f32 %v456_v13, %v455_v8  ;;  %v439_v42 = vrot.slane %v438_v26, 1  ;;  %v447_v50 = vadd.f32 %v446_v45, %v445_v28 }
 0x13c   :  { %v412_v20 = vadd.f32 %v411_v14, %v410_v10  ;;  %v430_v40 = vrot.slane %v429_v15, 2  ;;  %v422_v21 = vadd.f32 %v421_v16, %v420_v11 }
 0x13d   :  { %v450_v22 = vadd.f32 %v449_v18, %v448_v12  ;;  %v458_v23 = vrot.slane %v457_v19, 2  ;;  %v440_v38 = vadd.f32 %v439_v42, %v438_v26 }
 0x13e   :  { %v431_v24 = vadd.f32 %v430_v40, %v429_v15  ;;  %v423_v25 = vrot.slane %v422_v21, 2  ;;  %v471_v27 = vsel %vm470_vm0, %v419_v39, %v412_v20 }
 0x13f   :  { %v451_v29 = vrot.slane %v450_v22, 2  ;;  %v459_v32 = vadd.f32 %v458_v23, %v457_v19 }
 0x140   :  { %v424_v30 = vadd.f32 %v423_v25, %v422_v21  ;;  %v432_v33 = vrot.slane %v431_v24, 1 }
 0x141   :  { %v452_v31 = vadd.f32 %v451_v29, %v450_v22  ;;  %v460_v36 = vrot.slane %v459_v32, 1 }
 0x142   :  { %v425_v34 = vrot.slane %v424_v30, 1  ;;  %v433_v48 = vadd.f32 %v432_v33, %v431_v24 }
 0x143   :  { %v453_v46 = vrot.slane %v452_v31, 1  ;;  %v461_v53 = vadd.f32 %v460_v36, %v459_v32 }
 0x144   :  { %v426_v47 = vadd.f32 %v425_v34, %v424_v30 }
 0x145   :  { %v454_v52 = vadd.f32 %v453_v46, %v452_v31 }
 0x146   :  { %v473_v49 = vsel %vm472_vm1, %v426_v47, %v471_v27 }
 0x147   :  { %v475_v51 = vsel %vm474_vm2, %v433_v48, %v473_v49 }
 0x148   :  { %v477_v44 = vsel %vm476_vm3, %v440_v38, %v475_v51 }
 0x149   :  { %v479_v54 = vsel %vm478_vm4, %v447_v50, %v477_v44 }
 0x14a   :  { %v481_v55 = vsel %vm480_vm5, %v454_v52, %v479_v54 }
 0x14b   :  { %v483_v35 = vsel %vm482_vm6, %v461_v53, %v481_v55 }
 0x14c   :  { %491 = vst [vmem:[#allocation8] sm:$0xff] %v483_v35 }
 0x14d   :  { %697 = shalt.err (!%p694_p6)
}
 0x14e   :  { %s698_s20 = scalar_lea.hbm %s827_s4, 128 }
 0x14f   :  { %p699_p7 = scmp.ne.s32.totalorder %s827_s4, %s698_s20  ;;  %p702_p8 = scmp.lt.u32.totalorder %s698_s20, %s827_s4 }
 0x151   :  { %p704_p9 = pnand %p702_p8, %p699_p7 }
 0x153   :  { %707 = shalt.err (!%p704_p9)
}
 0x154   :  { %501 = dma.vmem_to_hbm [thread:$0]  %s499_s16, 128, %s827_s4, [#allocation5]  }
 0x155   :  { %712 = dma.done.wait [#allocation5], 128  }
 0x156   :  { %713 = vsyncadd [#allocation5], 4294967168 }
 0x157   :  { %505 = vsyncpa [#allocation4], 1 }
 0x158   :  { %506 = vsyncpa [#allocation7], 1 }
 0x159   :  { %507 = vsyncpa [#allocation5], 1 }

// kernel: tpu_custom_call.1
= control target key start
LH: loop header
LB: loop body
LE: loop exit
PB: predicated region body
PF: predicated region fallthrough
CT: control target
= control target key end

     0   :  { %9 = vsyncpa [#allocation4], 0  ;;  %s823_s0 = inlined_call_operand.hbm [shape: bf16[8,16,128], index: 0, kind: input, shape index: {}]   ;;  %s824_s1 = inlined_call_operand.hbm [shape: bf16[128,128], index: 1, kind: input, shape index: {}]   ;;  %s825_s2 = inlined_call_operand.vmem [shape: f32[1,128], index: 2, kind: input, shape index: {}]   ;;  %s826_s3 = inlined_call_operand.vmem [shape: f32[8,16], index: 3, kind: input, shape index: {}]   ;;  %s827_s4 = inlined_call_operand.hbm [shape: f32[8,128], index: 4, kind: output, shape index: {}]  }
   0x1   :  { %10 = vsyncpa [#allocation7], 0 }
   0x2   :  { %11 = vsyncpa [#allocation5], 0  ;;  %s714_s15 = smov [#allocation3]   ;;  %s642_s19 = scalar_lea.hbm %s823_s0, 1024 }
   0x3   :  { %s17_s16 = sshll.u32 %s714_s15, 4  ;;  %p643_p0 = scmp.ne.s32.totalorder %s823_s0, %s642_s19  ;;  %s18_s16 = int_to_ptr.vmem [resolvable:$true] %s17_s16 }
   0x4   :  { %p646_p1 = scmp.lt.u32.totalorder %s642_s19, %s823_s0 }
   0x6   :  { %p648_p2 = pnand %p646_p1, %p643_p0 }
   0x8   :  { %651 = shalt.err (!%p648_p2)
}
   0x9   :  { %s652_s24 = scalar_lea.vmem %s18_s16, 1024  ;;  %p657_p4 = scmp.lt.s32.totalorder %s18_s16, %s18_s16 }
   0xa   :  { %p653_p3 = scmp.ne.s32.totalorder %s18_s16, %s652_s24  ;;  %p658_p5 = scmp.lt.s32.totalorder %s652_s24, %s652_s24 }
   0xc   :  { %p659_p6 = por %p658_p5, %p657_p4 }
   0xe   :  { %p660_p7 = pnand %p659_p6, %p653_p3 }
  0x10   :  { %663 = shalt.err (!%p660_p7)
}
  0x11   :  { %s715_s25 = smov 64   ;;  %s716_s26 = smov 4  }
  0x12   :  { %23 = dma.hbm_to_vmem [thread:$0]  %s823_s0, 1024, %s18_s16, [#allocation4], %s715_s25, %s715_s25, %s716_s26  }
  0x13   :  { %s717_s29 = smov [#allocation6]   ;;  %s664_s7 = scalar_lea.hbm %s824_s1, 1024 }
  0x14   :  { %s29_s30 = sshll.u32 %s717_s29, 4  ;;  %p665_p8 = scmp.ne.s32.totalorder %s824_s1, %s664_s7  ;;  %s30_s30 = int_to_ptr.vmem [resolvable:$true] %s29_s30 }
  0x15   :  { %p668_p9 = scmp.lt.u32.totalorder %s664_s7, %s824_s1 }
  0x17   :  { %p670_p10 = pnand %p668_p9, %p665_p8 }
  0x19   :  { %673 = shalt.err (!%p670_p10)
}
  0x1a   :  { %s674_s12 = scalar_lea.vmem %s30_s30, 1024  ;;  %p679_p12 = scmp.lt.s32.totalorder %s30_s30, %s30_s30 }
  0x1b   :  { %p675_p11 = scmp.ne.s32.totalorder %s30_s30, %s674_s12  ;;  %p680_p13 = scmp.lt.s32.totalorder %s674_s12, %s674_s12 }
  0x1d   :  { %p681_p0 = por %p680_p13, %p679_p12 }
  0x1f   :  { %p682_p1 = pnand %p681_p0, %p675_p11 }
  0x21   :  { %685 = shalt.err (!%p682_p1)
}
  0x22   :  { %35 = dma.hbm_to_vmem [thread:$0]  %s824_s1, 1024, %s30_s30, [#allocation7], %s715_s25, %s715_s25, %s716_s26  }
  0x23   :  { %708 = dma.done.wait [#allocation4], 1024  }
  0x24   :  { %709 = vsyncadd [#allocation4], 4294966272 }
  0x25   :  { %710 = dma.done.wait [#allocation7], 1024  }
  0x26   :  { %711 = vsyncadd [#allocation7], 4294966272  ;;  %v594_v0 = vld [vmem:[#allocation6] sm:$0xff]   ;;  %v595_v1 = vld [vmem:[#allocation6 + $0x8] sm:$0xff]   ;;  %v302_v3 = vlaneseq  ;;  %vm470_vm0 = vcmask 1041409   ;;  %vm472_vm1 = vcmask 1042434  }
  0x27   :  { %541 = vmatprep.subr.bf16.mxu0 %v594_v0  ;;  %573 = vmatprep.subr.bf16.mxu1 %v594_v0  ;;  %v596_v2 = vld [vmem:[#allocation6 + $0x10] sm:$0xff]   ;;  %v597_v4 = vld [vmem:[#allocation6 + $0x18] sm:$0xff]   ;;  %v602_v5 = vld [vmem:[#allocation3] sm:$0xff]   ;;  %vm474_vm2 = vcmask 1043459   ;;  %vm476_vm3 = vcmask 1044484   ;;  %vm478_vm4 = vcmask 1045509  }
  0x28   :  { %542 = vmatpush3.bf16.msra.mxu0 %v594_v0  ;;  %581 = vmatpush3.bf16.msra.mxu1 %v594_v0  ;;  %v603_v6 = vld [vmem:[#allocation3 + $0x20] sm:$0xff]   ;;  %v768_v7 = vshrl.u32 %v302_v3, 7  ;;  %v599_v11 = vld [vmem:[#allocation6 + $0x28] sm:$0xff]   ;;  %v600_v15 = vld [vmem:[#allocation6 + $0x30] sm:$0xff]   ;;  %vm480_vm5 = vcmask 1046534   ;;  %vm482_vm6 = vcmask 1047559  }
  0x29   :  { %543 = vmatprep.subr.bf16.mxu0 %v595_v1  ;;  %574 = vmatprep.subr.bf16.mxu1 %v595_v1  ;;  %v598_v8 = vld [vmem:[#allocation6 + $0x20] sm:$0xff]   ;;  %v601_v17 = vld [vmem:[#allocation6 + $0x38] sm:$0xff]   ;;  %v604_v22 = vld [vmem:[#allocation3 + $0x8] sm:$0xff]  }
  0x2a   :  { %557 = vmatprep.mubr.bf16.mxu0 %v602_v5  ;;  %565 = vmatprep.mubr.bf16.mxu1 %v603_v6  ;;  %v315_v9 = vsub.s32 1, %v768_v7  ;;  %v304_v10 = vsub.s32 0, %v768_v7  ;;  %v47_v12 = vld [vmem:[%s826_s3] sm:$0xff]  ;;  %v326_v16 = vsub.s32 2, %v768_v7  ;;  %v337_v19 = vsub.s32 3, %v768_v7  ;;  %v605_v23 = vld [vmem:[#allocation3 + $0x28] sm:$0xff]  }
  0x2b   :  { %v348_v21 = vsub.s32 4, %v768_v7  ;;  %v606_v24 = vld [vmem:[#allocation3 + $0x10] sm:$0xff]   ;;  %v359_v27 = vsub.s32 5, %v768_v7  ;;  %v370_v29 = vsub.s32 6, %v768_v7  ;;  %v608_v30 = vld [vmem:[#allocation3 + $0x18] sm:$0xff]   ;;  %v381_v33 = vsub.s32 7, %v768_v7 }
  0x2c   :  { %544 = vmatpush3.bf16.msra.mxu0 %v595_v1  ;;  %582 = vmatpush3.bf16.msra.mxu1 %v595_v1  ;;  %v316_v13 = vrot.slane %v47_v12, %v315_v9  ;;  %v305_v14 = vrot.slane %v47_v12, %v304_v10  ;;  %v327_v18 = vrot.slane %v47_v12, %v326_v16  ;;  %v607_v25 = vld [vmem:[#allocation3 + $0x30] sm:$0xff]   ;;  %v609_v31 = vld [vmem:[#allocation3 + $0x38] sm:$0xff]   ;;  %v508_v42 = vld [vmem:[%s825_s2] ss:$0 sm:$0xff]  ;;  %s718_s2 = smov [#allocation8]  }
  0x2d   :  { %545 = vmatprep.subr.bf16.mxu0 %v596_v2  ;;  %575 = vmatprep.subr.bf16.mxu1 %v596_v2  ;;  %v338_v20 = vrot.slane %v47_v12, %v337_v19  ;;  %v349_v26 = vrot.slane %v47_v12, %v348_v21  ;;  %v360_v28 = vrot.slane %v47_v12, %v359_v27  ;;  %s498_s16 = sshll.u32 %s718_s2, 4  ;;  %s499_s16 = int_to_ptr.vmem [resolvable:$true] %s498_s16 }
  0x2e   :  { %318 = vbcast.lane.b32.xlu1 %v316_v13, 256  ;;  %307 = vbcast.lane.b32.xlu0 %v305_v14, 256  ;;  %v371_v32 = vrot.slane %v47_v12, %v370_v29  ;;  %v382_v34 = vrot.slane %v47_v12, %v381_v33  ;;  %s686_s17 = scalar_lea.vmem %s499_s16, 128  ;;  %p691_p3 = scmp.lt.s32.totalorder %s499_s16, %s499_s16 }
  0x2f   :  { %p687_p2 = scmp.ne.s32.totalorder %s499_s16, %s686_s17  ;;  %p692_p4 = scmp.lt.s32.totalorder %s686_s17, %s686_s17 }
  0x30   :  { %546 = vmatpush3.bf16.msra.mxu0 %v596_v2  ;;  %583 = vmatpush3.bf16.msra.mxu1 %v596_v2 }
  0x31   :  { %547 = vmatprep.subr.bf16.mxu0 %v597_v4  ;;  %576 = vmatprep.subr.bf16.mxu1 %v597_v4  ;;  %p693_p5 = por %p692_p4, %p691_p3 }
  0x32   :  { %322 = vbcast.lane.b32.xlu1 %v316_v13, 264  ;;  %311 = vbcast.lane.b32.xlu0 %v305_v14, 264 }
  0x33   :  { %p694_p6 = pnand %p693_p5, %p687_p2 }
  0x34   :  { %548 = vmatpush3.bf16.msra.mxu0 %v597_v4  ;;  %584 = vmatpush3.bf16.msra.mxu1 %v597_v4 }
  0x35   :  { %549 = vmatprep.subr.bf16.mxu0 %v598_v8  ;;  %577 = vmatprep.subr.bf16.mxu1 %v598_v8 }
  0x36   :  { %333 = vbcast.lane.b32.xlu1 %v327_v18, 264  ;;  %329 = vbcast.lane.b32.xlu0 %v327_v18, 256 }
  0x38   :  { %550 = vmatpush3.bf16.msra.mxu0 %v598_v8  ;;  %585 = vmatpush3.bf16.msra.mxu1 %v598_v8 }
  0x39   :  { %551 = vmatprep.subr.bf16.mxu0 %v599_v11  ;;  %578 = vmatprep.subr.bf16.mxu1 %v599_v11 }
  0x3a   :  { %344 = vbcast.lane.b32.xlu1 %v338_v20, 264  ;;  %340 = vbcast.lane.b32.xlu0 %v338_v20, 256 }
  0x3c   :  { %552 = vmatpush3.bf16.msra.mxu0 %v599_v11  ;;  %586 = vmatpush3.bf16.msra.mxu1 %v599_v11 }
  0x3d   :  { %553 = vmatprep.subr.bf16.mxu0 %v600_v15  ;;  %579 = vmatprep.subr.bf16.mxu1 %v600_v15 }
  0x3e   :  { %355 = vbcast.lane.b32.xlu1 %v349_v26, 264  ;;  %351 = vbcast.lane.b32.xlu0 %v349_v26, 256 }
  0x40   :  { %554 = vmatpush3.bf16.msra.mxu0 %v600_v15  ;;  %587 = vmatpush3.bf16.msra.mxu1 %v600_v15 }
  0x41   :  { %555 = vmatprep.subr.bf16.mxu0 %v601_v17  ;;  %580 = vmatprep.subr.bf16.mxu1 %v601_v17 }
  0x42   :  { %366 = vbcast.lane.b32.xlu1 %v360_v28, 264  ;;  %362 = vbcast.lane.b32.xlu0 %v360_v28, 256 }
  0x44   :  { %556 = vmatpush3.bf16.msra.mxu0 %v601_v17  ;;  %588 = vmatpush3.bf16.msra.mxu1 %v601_v17 }
  0x46   :  { %377 = vbcast.lane.b32.xlu1 %v371_v32, 264  ;;  %373 = vbcast.lane.b32.xlu0 %v371_v32, 256 }
  0x47   :  { %558 = vmatmul.mubr.bf16.vlgmr.msra.gmra.mrb[0].mxu0 %v604_v22  ;;  %566 = vmatmul.mubr.bf16.vlgmr.msra.gmra.mrb[0].mxu1 %v605_v23 }
  0x48   :  { %561 = vmatprep.mubr.bf16.mxu0 %v606_v24  ;;  %569 = vmatprep.mubr.bf16.mxu1 %v607_v25 }
  0x4a   :  { %388 = vbcast.lane.b32.xlu1 %v382_v34, 264  ;;  %384 = vbcast.lane.b32.xlu0 %v382_v34, 256 }
  0x4f   :  { %562 = vmatmul.mubr.bf16.gmra.mrb[4].mxu0 %v608_v30  ;;  %570 = vmatmul.mubr.bf16.gmra.mrb[4].mxu1 %v609_v31 }
  0xa0   :  { %v781_v35 = vpop.permute.xlu0 %307  ;;  %v783_v36 = vpop.permute.xlu1 %318 }
  0xa4   :  { %v785_v37 = vpop.permute.xlu0 %311  ;;  %v787_v38 = vpop.permute.xlu1 %322 }
  0xa8   :  { %v789_v39 = vpop.permute.xlu0 %329  ;;  %v791_v40 = vpop.permute.xlu1 %333 }
  0xac   :  { %v793_v41 = vpop.permute.xlu0 %340  ;;  %v798_v43 = vpop.permute.xlu1 %344 }
  0xb0   :  { %v800_v44 = vpop.permute.xlu0 %351  ;;  %v356_v61 = vpop.permute.xlu1 %355 }
  0xb4   :  { %v363_v62 = vpop.permute.xlu0 %362  ;;  %v367_v13 = vpop.permute.xlu1 %366 }
  0xb8   :  { %v374_v20 = vpop.permute.xlu0 %373  ;;  %v378_v26 = vpop.permute.xlu1 %377 }
 0x11a   :  { %v559_v45 = vpop.f32.mrb[0].mxu0  ;;  %v567_v46 = vpop.f32.mrb[0].mxu1 }
 0x11b   :  { %v231_v47 = vadd.f32 %v559_v45, %v508_v42  ;;  %v263_v48 = vadd.f32 %v567_v46, %v508_v42  ;;  %v222_v49 = vpop.f32.mrb[1].mxu0  ;;  %v254_v50 = vpop.f32.mrb[1].mxu1 }
 0x11c   :  { %v223_v51 = vadd.f32 %v508_v42, %v222_v49  ;;  %v255_v52 = vadd.f32 %v508_v42, %v254_v50  ;;  %v560_v53 = vpop.f32.mrb[2].mxu0  ;;  %v568_v54 = vpop.f32.mrb[2].mxu1 }
 0x11d   :  { %610 = vtanh.f32 %v231_v47  ;;  %v234_v55 = vadd.f32 %v560_v53, %v508_v42  ;;  %v225_v56 = vpop.f32.mrb[3].mxu0  ;;  %v257_v57 = vpop.f32.mrb[3].mxu1  ;;  %v266_v58 = vadd.f32 %v568_v54, %v508_v42 }
 0x11e   :  { %612 = vtanh.f32 %v263_v48  ;;  %v226_v59 = vadd.f32 %v508_v42, %v225_v56  ;;  %v258_v60 = vadd.f32 %v508_v42, %v257_v57  ;;  %v385_v48 = vpop.permute.xlu0 %384 }
 0x11f   :  { %614 = vtanh.f32 %v223_v51 }
 0x120   :  { %616 = vtanh.f32 %v255_v52 }
 0x121   :  { %618 = vtanh.f32 %v234_v55 }
 0x122   :  { %620 = vtanh.f32 %v266_v58  ;;  %v563_v63 = vpop.f32.mrb[4].mxu0  ;;  %v571_v0 = vpop.f32.mrb[4].mxu1 }
 0x123   :  { %622 = vtanh.f32 %v226_v59  ;;  %v247_v1 = vadd.f32 %v563_v63, %v508_v42  ;;  %v279_v2 = vadd.f32 %v571_v0, %v508_v42  ;;  %v238_v3 = vpop.f32.mrb[5].mxu0  ;;  %v270_v4 = vpop.f32.mrb[5].mxu1 }
 0x124   :  { %624 = vtanh.f32 %v258_v60  ;;  %v239_v5 = vadd.f32 %v508_v42, %v238_v3  ;;  %v271_v6 = vadd.f32 %v508_v42, %v270_v4  ;;  %v564_v7 = vpop.f32.mrb[6].mxu0  ;;  %v572_v8 = vpop.f32.mrb[6].mxu1 }
 0x125   :  { %626 = vtanh.f32 %v247_v1  ;;  %v250_v9 = vadd.f32 %v564_v7, %v508_v42  ;;  %v241_v10 = vpop.f32.mrb[7].mxu0  ;;  %v273_v11 = vpop.f32.mrb[7].mxu1  ;;  %v282_v12 = vadd.f32 %v572_v8, %v508_v42 }
 0x126   :  { %628 = vtanh.f32 %v279_v2  ;;  %v242_v15 = vadd.f32 %v508_v42, %v241_v10  ;;  %v274_v17 = vadd.f32 %v508_v42, %v273_v11 }
 0x127   :  { %v611_v14 = vpop.eup %610  ;;  %630 = vtanh.f32 %v239_v5 }
 0x128   :  { %v613_v16 = vpop.eup %612  ;;  %632 = vtanh.f32 %v271_v6  ;;  %v392_v24 = vmul.f32 %v611_v14, %v783_v36 }
 0x129   :  { %v615_v18 = vpop.eup %614  ;;  %634 = vtanh.f32 %v250_v9  ;;  %v400_v22 = vmul.f32 %v613_v16, %v363_v62 }
 0x12a   :  { %v617_v19 = vpop.eup %616  ;;  %636 = vtanh.f32 %v282_v12  ;;  %v390_v31 = vmul.f32 %v615_v18, %v781_v35 }
 0x12b   :  { %v619_v21 = vpop.eup %618  ;;  %638 = vtanh.f32 %v242_v15  ;;  %v398_v28 = vmul.f32 %v617_v19, %v800_v44  ;;  %v389_v44 = vpop.permute.xlu1 %388 }
 0x12c   :  { %v621_v23 = vpop.eup %620  ;;  %v393_v25 = vmul.f32 %v619_v21, %v787_v38  ;;  %640 = vtanh.f32 %v274_v17 }
 0x12d   :  { %v623_v27 = vpop.eup %622  ;;  %v401_v29 = vmul.f32 %v621_v23, %v367_v13 }
 0x12e   :  { %v625_v30 = vpop.eup %624  ;;  %v413_v32 = vadd.f32 %v393_v25, %v392_v24  ;;  %v391_v33 = vmul.f32 %v623_v27, %v785_v37 }
 0x12f   :  { %v627_v34 = vpop.eup %626  ;;  %v399_v42 = vmul.f32 %v625_v30, %v356_v61  ;;  %v441_v45 = vadd.f32 %v401_v29, %v400_v22 }
 0x130   :  { %v629_v46 = vpop.eup %628  ;;  %v414_v47 = vrot.slane %v413_v32, 4  ;;  %v406_v36 = vadd.f32 %v391_v33, %v390_v31  ;;  %v396_v58 = vmul.f32 %v627_v34, %v793_v41 }
 0x131   :  { %v631_v38 = vpop.eup %630  ;;  %v434_v49 = vadd.f32 %v399_v42, %v398_v28  ;;  %v442_v55 = vrot.slane %v441_v45, 4  ;;  %v404_v35 = vmul.f32 %v629_v46, %v385_v48 }
 0x132   :  { %v633_v50 = vpop.eup %632  ;;  %v415_v51 = vadd.f32 %v414_v47, %v413_v32  ;;  %v407_v52 = vrot.slane %v406_v36, 4  ;;  %v394_v61 = vmul.f32 %v631_v38, %v789_v39 }
 0x133   :  { %v635_v53 = vpop.eup %634  ;;  %v435_v54 = vrot.slane %v434_v49, 4  ;;  %v402_v63 = vmul.f32 %v633_v50, %v374_v20  ;;  %v443_v6 = vadd.f32 %v442_v55, %v441_v45 }
 0x134   :  { %v637_v56 = vpop.eup %636  ;;  %v416_v57 = vrot.slane %v415_v51, 2  ;;  %v408_v37 = vadd.f32 %v407_v52, %v406_v36  ;;  %v397_v59 = vmul.f32 %v635_v53, %v798_v43 }
 0x135   :  { %v639_v60 = vpop.eup %638  ;;  %v436_v62 = vadd.f32 %v435_v54, %v434_v49  ;;  %v405_v0 = vmul.f32 %v637_v56, %v389_v44  ;;  %v444_v17 = vrot.slane %v443_v6, 2 }
 0x136   :  { %v641_v1 = vpop.eup %640  ;;  %v417_v2 = vadd.f32 %v416_v57, %v415_v51  ;;  %v409_v3 = vrot.slane %v408_v37, 2  ;;  %v427_v4 = vadd.f32 %v397_v59, %v396_v58  ;;  %v395_v5 = vmul.f32 %v639_v60, %v791_v40 }
 0x137   :  { %v403_v7 = vmul.f32 %v641_v1, %v378_v26  ;;  %v455_v8 = vadd.f32 %v405_v0, %v404_v35  ;;  %v437_v43 = vrot.slane %v436_v62, 2  ;;  %v445_v28 = vadd.f32 %v444_v17, %v443_v6 }
 0x138   :  { %v418_v9 = vrot.slane %v417_v2, 1  ;;  %v410_v10 = vadd.f32 %v409_v3, %v408_v37  ;;  %v428_v41 = vrot.slane %v427_v4, 4  ;;  %v420_v11 = vadd.f32 %v395_v5, %v394_v61 }
 0x139   :  { %v448_v12 = vadd.f32 %v403_v7, %v402_v63  ;;  %v456_v13 = vrot.slane %v455_v8, 4  ;;  %v438_v26 = vadd.f32 %v437_v43, %v436_v62  ;;  %v446_v45 = vrot.slane %v445_v28, 1 }
 0x13a   :  { %v419_v39 = vadd.f32 %v418_v9, %v417_v2  ;;  %v411_v14 = vrot.slane %v410_v10, 1  ;;  %v429_v15 = vadd.f32 %v428_v41, %v427_v4  ;;  %v421_v16 = vrot.slane %v420_v11, 4 }
 0x13b   :  { %v449_v18 = vrot.slane %v448_v12, 4  ;;  %v457_v19 = vadd.f32 %v456_v13, %v455_v8  ;;  %v439_v42 = vrot.slane %v438_v26, 1  ;;  %v447_v50 = vadd.f32 %v446_v45, %v445_v28 }
 0x13c   :  { %v412_v20 = vadd.f32 %v411_v14, %v410_v10  ;;  %v430_v40 = vrot.slane %v429_v15, 2  ;;  %v422_v21 = vadd.f32 %v421_v16, %v420_v11 }
 0x13d   :  { %v450_v22 = vadd.f32 %v449_v18, %v448_v12  ;;  %v458_v23 = vrot.slane %v457_v19, 2  ;;  %v440_v38 = vadd.f32 %v439_v42, %v438_v26 }
 0x13e   :  { %v431_v24 = vadd.f32 %v430_v40, %v429_v15  ;;  %v423_v25 = vrot.slane %v422_v21, 2  ;;  %v471_v27 = vsel %vm470_vm0, %v419_v39, %v412_v20 }
 0x13f   :  { %v451_v29 = vrot.slane %v450_v22, 2  ;;  %v459_v32 = vadd.f32 %v458_v23, %v457_v19 }
 0x140   :  { %v424_v30 = vadd.f32 %v423_v25, %v422_v21  ;;  %v432_v33 = vrot.slane %v431_v24, 1 }
 0x141   :  { %v452_v31 = vadd.f32 %v451_v29, %v450_v22  ;;  %v460_v36 = vrot.slane %v459_v32, 1 }
 0x142   :  { %v425_v34 = vrot.slane %v424_v30, 1  ;;  %v433_v48 = vadd.f32 %v432_v33, %v431_v24 }
 0x143   :  { %v453_v46 = vrot.slane %v452_v31, 1  ;;  %v461_v53 = vadd.f32 %v460_v36, %v459_v32 }
 0x144   :  { %v426_v47 = vadd.f32 %v425_v34, %v424_v30 }
 0x145   :  { %v454_v52 = vadd.f32 %v453_v46, %v452_v31 }
 0x146   :  { %v473_v49 = vsel %vm472_vm1, %v426_v47, %v471_v27 }
 0x147   :  { %v475_v51 = vsel %vm474_vm2, %v433_v48, %v473_v49 }
 0x148   :  { %v477_v44 = vsel %vm476_vm3, %v440_v38, %v475_v51 }
 0x149   :  { %v479_v54 = vsel %vm478_vm4, %v447_v50, %v477_v44 }
 0x14a   :  { %v481_v55 = vsel %vm480_vm5, %v454_v52, %v479_v54 }
 0x14b   :  { %v483_v35 = vsel %vm482_vm6, %v461_v53, %v481_v55 }
 0x14c   :  { %491 = vst [vmem:[#allocation8] sm:$0xff] %v483_v35 }
 0x14d   :  { %697 = shalt.err (!%p694_p6)
}
 0x14e   :  { %s698_s20 = scalar_lea.hbm %s827_s4, 128 }
 0x14f   :  { %p699_p7 = scmp.ne.s32.totalorder %s827_s4, %s698_s20  ;;  %p702_p8 = scmp.lt.u32.totalorder %s698_s20, %s827_s4 }
 0x151   :  { %p704_p9 = pnand %p702_p8, %p699_p7 }
 0x153   :  { %707 = shalt.err (!%p704_p9)
}
 0x154   :  { %501 = dma.vmem_to_hbm [thread:$0]  %s499_s16, 128, %s827_s4, [#allocation5]  }
 0x155   :  { %712 = dma.done.wait [#allocation5], 128  }
 0x156   :  { %713 = vsyncadd [#allocation5], 4294967168 }
 0x157   :  { %505 = vsyncpa [#allocation4], 1 }
 0x158   :  { %506 = vsyncpa [#allocation7], 1 }
 0x159   :  { %507 = vsyncpa [#allocation5], 1 }

</bundles_post_ra>
